<compile_context>
chip_gen: v7x
topology: tpu7x:2x2x1
jax: 0.10.0
libtpu: 0.0.40
codegen_flags: <defaults>
</compile_context>

<pallas_src>
import functools

import jax
import jax.numpy as jnp
from jax.experimental import pallas as pl
from jax.experimental.pallas import tpu as pltpu


# ----------------------------------------------------------------------------
# Kernels
# ----------------------------------------------------------------------------
def _ln_fold_kernel(x_ref, seg_ref, w_ref, o_ref, *, eps, inv_c):
    """Lane-folded path: each 128-lane row holds F = 128/C complete LN rows.

    x_ref: (tm, 128)  seg_ref: (128, 128) block-diagonal ones  w_ref: (1, 128)
    """
    x = x_ref[...].astype(jnp.float32)
    seg = seg_ref[...]                       # f32 0/1 matrix, resident in VMEM
    w = w_ref[...].astype(jnp.float32)

    # Segmented sums on the MXU: result already broadcast to every lane of its
    # segment, so no extra cross-lane broadcast is needed.
    s = jnp.dot(x, seg, preferred_element_type=jnp.float32,
                precision=jax.lax.Precision.HIGHEST)
    sq = jnp.dot(x * x, seg, preferred_element_type=jnp.float32,
                 precision=jax.lax.Precision.HIGHEST)

    mu = s * inv_c
    var = jnp.maximum(sq * inv_c - mu * mu, 0.0)   # one-pass var, clamp cancellation
    inv = jax.lax.rsqrt(var + eps)
    o_ref[...] = (x * inv * w).astype(o_ref.dtype)


def _ln_rowwise_kernel(x_ref, w_ref, o_ref, *, eps):
    """Fallback path: reduce over the full channel (lane) axis.

    x_ref: (tm, C)  w_ref: (1, C)
    """
    x = x_ref[...].astype(jnp.float32)
    w = w_ref[...].astype(jnp.float32)

    mu = jnp.mean(x, axis=-1, keepdims=True)
    ex2 = jnp.mean(x * x, axis=-1, keepdims=True)
    var = jnp.maximum(ex2 - mu * mu, 0.0)
    inv = jax.lax.rsqrt(var + eps)
    o_ref[...] = (x * inv * w).astype(o_ref.dtype)


# ----------------------------------------------------------------------------
# Wrapper
# ----------------------------------------------------------------------------
def _round_up(n, m):
    return ((n + m - 1) // m) * m


def _choose_row_tile(rows, row_bytes, block_bytes=1 << 20, max_rows=4096):
    """Sublane-aligned row tile sized from a VMEM byte budget, >=2 grid steps."""
    if rows <= 8:
        return rows                                   # single full-extent block
    tm = (block_bytes // max(row_bytes, 1)) // 8 * 8  # ~block_bytes per input block
    tm = max(8, min(tm, max_rows))
    tm = min(tm, _round_up(rows, 8))
    # Guarantee >= 2 grid steps so the "parallel" axis can shard across v7x cores.
    tm = min(tm, _round_up(pl.cdiv(rows, 2), 8))
    return max(8, tm)


def biasfree_layernorm(x, weight, *, eps=1e-5):
    """x: (..., C), weight: (C,) -> same shape/dtype as x."""
    orig_shape = x.shape
    C = orig_shape[-1]
    x2 = x.reshape(-1, C)                 # fold batch/seq/spatial into rows
    R = x2.shape[0]
    itemsize = jnp.dtype(x.dtype).itemsize

    fold = 1
    if C < 128 and 128 % C == 0 and R % (128 // C) == 0:
        fold = 128 // C

    vmem_params = pltpu.CompilerParams(
        dimension_semantics=("parallel",),            # megacore sharding on v7x
        vmem_limit_bytes=32 * 1024 * 1024,
    )

    if fold > 1:
        # ---- lane-dense folded path (small C) --------------------------------
        W = 128
        rows = R // fold
        xk = x2.reshape(rows, W)                      # contiguous -> cheap reshape
        w_in = jnp.tile(weight.reshape(-1), fold).reshape(1, W)   # keep own dtype
        lane_seg = jnp.arange(W, dtype=jnp.int32) // C
        seg = (lane_seg[:, None] == lane_seg[None, :]).astype(jnp.float32)

        tm = _choose_row_tile(rows, W * itemsize)
        grid = (pl.cdiv(rows, tm),)                   # ragged last block, no pad

        out = pl.pallas_call(
            functools.partial(_ln_fold_kernel, eps=eps, inv_c=1.0 / C),
            out_shape=jax.ShapeDtypeStruct((rows, W), x.dtype),
            grid=grid,
            in_specs=[
                pl.BlockSpec((tm, W), lambda i: (i, 0)),   # row tile, lane dense
                pl.BlockSpec((W, W), lambda i: (0, 0)),    # block-diag ones (resident)
                pl.BlockSpec((1, W), lambda i: (0, 0)),    # tiled weight
            ],
            out_specs=pl.BlockSpec((tm, W), lambda i: (i, 0)),
            compiler_params=vmem_params,
        )(xk, seg, w_in)
        return out.reshape(orig_shape)

    # ---- row-wise fallback path (C >= 128 or C not a divisor of 128) --------
    rows = R
    w_in = weight.reshape(1, C)                       # keep weight's own dtype
    tm = _choose_row_tile(rows, C * itemsize)
    grid = (pl.cdiv(rows, tm),)                       # ragged last block, no pad

    out = pl.pallas_call(
        functools.partial(_ln_rowwise_kernel, eps=eps),
        out_shape=jax.ShapeDtypeStruct((rows, C), x.dtype),
        grid=grid,
        in_specs=[
            pl.BlockSpec((tm, C), lambda i: (i, 0)),
            pl.BlockSpec((1, C), lambda i: (0, 0)),
        ],
        out_specs=pl.BlockSpec((tm, C), lambda i: (i, 0)),
        compiler_params=vmem_params,
    )(x2, w_in)
    return out.reshape(orig_shape)


# ----------------------------------------------------------------------------
# Pure-JAX reference (mirrors the PyTorch module exactly)
# ----------------------------------------------------------------------------
def biasfree_layernorm_ref(x, weight, eps=1e-5):
    xf = x.astype(jnp.float32)
    var = jnp.var(xf, axis=-1, keepdims=True)         # ddof=0 (unbiased=False)
    out = xf / jnp.sqrt(var + eps) * weight.astype(jnp.float32)
    return out.astype(x.dtype)


# ----------------------------------------------------------------------------
if __name__ == "__main__":
    key = jax.random.PRNGKey(0)
    k1, k2, k3, k4 = jax.random.split(key, 4)

    fn = jax.jit(biasfree_layernorm)

    # Case 1: Restormer-style (tokens x channels), C=32 -> lane-folded MXU path.
    B, HW, C = 2, 16 * 16, 32
    x1 = jax.random.normal(k1, (B, HW, C), jnp.float32)
    w1 = jnp.ones((C,), jnp.float32) + 0.1 * jax.random.normal(k2, (C,), jnp.float32)
    out1 = jax.block_until_ready(fn(x1, w1))
    ref1 = biasfree_layernorm_ref(x1, w1)
    assert out1.shape == x1.shape
    assert bool(jnp.all(jnp.isfinite(out1)))
    assert bool(jnp.allclose(out1, ref1, rtol=1e-5, atol=1e-5)), (
        float(jnp.max(jnp.abs(out1 - ref1))))

    # Case 2: C=48 (not a divisor of 128) with a row count that does not divide
    # the tile -> row-wise path, cdiv grid with a masked ragged last block.
    B2, T2, C2 = 2, 100, 48
    x2 = jax.random.normal(k3, (B2, T2, C2), jnp.float32)
    w2 = jnp.ones((C2,), jnp.float32) + 0.1 * jax.random.normal(k4, (C2,), jnp.float32)
    out2 = jax.block_until_ready(fn(x2, w2))
    ref2 = biasfree_layernorm_ref(x2, w2)
    assert out2.shape == x2.shape
    assert bool(jnp.all(jnp.isfinite(out2)))
    assert bool(jnp.allclose(out2, ref2, rtol=1e-5, atol=1e-5)), (
        float(jnp.max(jnp.abs(out2 - ref2))))

    print("KERNEL_OK")
</pallas_src>

<mosaic_0001>
module attributes {stable_mosaic.version = 11 : i64} {
  func.func @_ln_fold_kernel(%arg0: i32, %arg1: memref<64x128xf32, #tpu.memory_space<vmem>>, %arg2: memref<128x128xf32, #tpu.memory_space<vmem>>, %arg3: memref<1x128xf32, #tpu.memory_space<vmem>>, %arg4: memref<64x128xf32, #tpu.memory_space<vmem>>) attributes {dimension_semantics = [#tpu.dimension_semantics<parallel>], iteration_bounds = array<i64: 2>, scalar_prefetch = 0 : i64, scratch_operands = 0 : i64, tpu.core_type = #tpu.core_type<tc>, window_params = [{transform_indices = @transform_0, window_bounds = array<i64: 64, 128>}, {pipeline_mode = #tpu.pipeline_mode<synchronous>, transform_indices = @transform_1, window_bounds = array<i64: 128, 128>}, {pipeline_mode = #tpu.pipeline_mode<synchronous>, transform_indices = @transform_2, window_bounds = array<i64: 1, 128>}, {transform_indices = @transform_3, window_bounds = array<i64: 64, 128>}]} {
    %c0 = arith.constant 0 : index
    %c0_0 = arith.constant 0 : index
    %0 = vector.load %arg1[%c0, %c0_0] : memref<64x128xf32, #tpu.memory_space<vmem>>, vector<64x128xf32>
    %c0_1 = arith.constant 0 : index
    %c0_2 = arith.constant 0 : index
    %1 = vector.load %arg2[%c0_1, %c0_2] : memref<128x128xf32, #tpu.memory_space<vmem>>, vector<128x128xf32>
    %c0_3 = arith.constant 0 : index
    %c0_4 = arith.constant 0 : index
    %2 = vector.load %arg3[%c0_3, %c0_4] : memref<1x128xf32, #tpu.memory_space<vmem>>, vector<1x128xf32>
    %cst = arith.constant dense<0.000000e+00> : vector<64x128xf32>
    %3 = tpu.matmul %0, %1, %cst {dimension_numbers = #tpu.dot_dimension_numbers<[1], [0], [0], [1], [0, 0, 1, 1], [], []>, precision = #tpu.contract_precision<fp32>} : vector<64x128xf32>, vector<128x128xf32>, vector<64x128xf32> -> vector<64x128xf32>
    %4 = arith.mulf %0, %0 : vector<64x128xf32>
    %cst_5 = arith.constant dense<0.000000e+00> : vector<64x128xf32>
    %5 = tpu.matmul %4, %1, %cst_5 {dimension_numbers = #tpu.dot_dimension_numbers<[1], [0], [0], [1], [0, 0, 1, 1], [], []>, precision = #tpu.contract_precision<fp32>} : vector<64x128xf32>, vector<128x128xf32>, vector<64x128xf32> -> vector<64x128xf32>
    %cst_6 = arith.constant 3.125000e-02 : f32
    %6 = vector.broadcast %cst_6 : f32 to vector<64x128xf32>
    %7 = arith.mulf %3, %6 : vector<64x128xf32>
    %cst_7 = arith.constant 3.125000e-02 : f32
    %8 = vector.broadcast %cst_7 : f32 to vector<64x128xf32>
    %9 = arith.mulf %5, %8 : vector<64x128xf32>
    %10 = arith.mulf %7, %7 : vector<64x128xf32>
    %11 = arith.subf %9, %10 : vector<64x128xf32>
    %cst_8 = arith.constant 0.000000e+00 : f32
    %12 = vector.broadcast %cst_8 : f32 to vector<64x128xf32>
    %13 = arith.maximumf %11, %12 : vector<64x128xf32>
    %cst_9 = arith.constant 9.99999974E-6 : f32
    %14 = vector.broadcast %cst_9 : f32 to vector<64x128xf32>
    %15 = arith.addf %13, %14 : vector<64x128xf32>
    %16 = math.rsqrt %15 : vector<64x128xf32>
    %17 = arith.mulf %0, %16 : vector<64x128xf32>
    %18 = vector.broadcast %2 : vector<1x128xf32> to vector<64x128xf32>
    %19 = arith.mulf %17, %18 : vector<64x128xf32>
    %c0_10 = arith.constant 0 : index
    %c0_11 = arith.constant 0 : index
    %20 = vector.load %arg4[%c0_10, %c0_11] : memref<64x128xf32, #tpu.memory_space<vmem>>, vector<64x128xf32>
    tpu.vector_store %arg4[%c0_10, %c0_11], %19 {strides = array<i32>} : memref<64x128xf32, #tpu.memory_space<vmem>>, vector<64x128xf32>,
    return
  }
  func.func @transform_0(%arg0: i32) -> (i32, i32) {
    %c0_i32 = arith.constant 0 : i32
    %c0_i32_0 = arith.constant 0 : i32
    return %arg0, %c0_i32 : i32, i32
  }
  func.func @transform_1(%arg0: i32) -> (i32, i32) {
    %c0_i32 = arith.constant 0 : i32
    %c0_i32_0 = arith.constant 0 : i32
    %c0_i32_1 = arith.constant 0 : i32
    return %c0_i32, %c0_i32_0 : i32, i32
  }
  func.func @transform_2(%arg0: i32) -> (i32, i32) {
    %c0_i32 = arith.constant 0 : i32
    %c0_i32_0 = arith.constant 0 : i32
    %c0_i32_1 = arith.constant 0 : i32
    return %c0_i32, %c0_i32_0 : i32, i32
  }
  func.func @transform_3(%arg0: i32) -> (i32, i32) {
    %c0_i32 = arith.constant 0 : i32
    %c0_i32_0 = arith.constant 0 : i32
    return %arg0, %c0_i32 : i32, i32
  }
}

</mosaic_0001>

<bundles_post_ra>
// kernel: tile.8
= control target key start
LH: loop header
LB: loop body
LE: loop exit
PB: predicated region body
PF: predicated region fallthrough
CT: control target
= control target key end

     0   :  { %s22_s0 = inlined_call_operand.vmem [shape: f32[32], index: 0, kind: input, shape index: {}]   ;;  %s23_s1 = inlined_call_operand.vmem [shape: f32[4,32], index: 1, kind: output, shape index: {}]  }
   0x1   :  { %v4_v0 = vld [vmem:[%s22_s0] ss:$0 sm:$0xff] }
   0x2   :  { %5 = vst [vmem:[%s23_s1] sm:$0xf] %v4_v0 }

// kernel: tile.9
= control target key start
LH: loop header
LB: loop body
LE: loop exit
PB: predicated region body
PF: predicated region fallthrough
CT: control target
= control target key end

     0   :  { %vm7_vm0 = vcmask 261120   ;;  %s37_s8 = smov 32   ;;  %s38_s9 = smov 64   ;;  %vm13_vm1 = vcmask 1048320   ;;  %vm19_vm2 = vcmask 785920   ;;  %vm25_vm3 = vcmask 523520   ;;  %s55_s0 = inlined_call_operand.vmem [shape: f32[4,32], index: 0, kind: input, shape index: {}]   ;;  %s56_s1 = inlined_call_operand.vmem [shape: f32[1,128], index: 1, kind: output, shape index: {}]  }
   0x1   :  { %v4_v0 = vld [vmem:[%s55_s0] sm:$0xf]  ;;  %s36_s0 = smov 96  }
   0x2   :  { %5 = vst [vmem:[#allocation1] sm:$0xf] %v4_v0 }
   0x9   :  { %v10_v1 = vld [vmem:[#allocation1 + $0x3] sm:$0x1]   ;;  %v22_v2 = vld [vmem:[#allocation1 + $0x1] sm:$0x1]   ;;  %v6_v3 = vld [vmem:[#allocation1] sm:$0x1]  }
   0xa   :  { %11 = vrot.lane.b32.xlu0 %v10_v1, %s36_s0  ;;  %23 = vrot.lane.b32.xlu1 %v22_v2, %s37_s8  ;;  %v16_v4 = vld [vmem:[#allocation1 + $0x2] sm:$0x1]   ;;  %8 = vst.msk [vmem:[#allocation0] sm:$0x1] %vm7_vm0, %v6_v3  }
   0xe   :  { %17 = vrot.lane.b32.xlu0 %v16_v4, %s38_s9 }
  0x7c   :  { %v12_v5 = vpop.permute.xlu0 %11   ;;  %v24_v6 = vpop.permute.xlu1 %23  }
  0x7d   :  { %14 = vst.msk [vmem:[#allocation0] sm:$0x1] %vm13_vm1, %v12_v5  }
  0x80   :  { %v18_v7 = vpop.permute.xlu0 %17  }
  0x81   :  { %20 = vst.msk [vmem:[#allocation0] sm:$0x1] %vm19_vm2, %v18_v7  }
  0x82   :  { %26 = vst.msk [vmem:[#allocation0] sm:$0x1] %vm25_vm3, %v24_v6  }
  0x89   :  { %v30_v8 = vld [vmem:[#allocation0] sm:$0x1] }
  0x8a   :  { %32 = vst [vmem:[%s56_s1] sm:$0x1] %v30_v8 }

// kernel: biasfree_layernorm.1
= control target key start
LH: loop header
LB: loop body
LE: loop exit
PB: predicated region body
PF: predicated region fallthrough
CT: control target
= control target key end

     0   :  { %s3579_s12 = smov 0   ;;  %s4372_s0 = inlined_call_operand.vmem [shape: f32[128,128], index: 0, kind: input, shape index: {}]   ;;  %s4373_s1 = inlined_call_operand.vmem [shape: f32[128,128], index: 1, kind: input, shape index: {}]   ;;  %s4374_s2 = inlined_call_operand.vmem [shape: f32[1,128], index: 2, kind: input, shape index: {}]   ;;  %s4375_s3 = inlined_call_operand.vmem [shape: f32[128,128], index: 3, kind: output, shape index: {}]  }
   0x1 LB: > { %s2233_s13 = sadd.s32 4294967295, %s3557_s12   ;;  %p2237_p0 = scmp.ge.s32.totalorder %s3557_s12, 1  ;;  %s3557_s12 = sphi %s3579_s12, %s13_s12  }
   0x2   : > { %p138_p1 = scmp.lt.s32.totalorder %s3557_s12, 3 }
   0x4   : > { %p139_p2 = pnand %p2237_p0, %p138_p1 }
   0x6   : > { %142 = sbr.rel (%p139_p2) target bundleno = 461 (0x1cd), region = 32 }
   0xd   : > { %v182_v0 = vld [vmem:[%s4373_s1] sm:$0xff]  ;;  %v183_v1 = vld [vmem:[%s4373_s1 + $0x8] sm:$0xff]  ;;  %v184_v2 = vld [vmem:[%s4373_s1 + $0x10] sm:$0xff]  ;;  %s2238_s20 = sshll.u32 %s2233_s13, 3 }
   0xe   : > { %v200_v3 = vand.u32 4294901760, %v182_v0  ;;  %v203_v4 = vand.u32 4294901760, %v183_v1  ;;  %v185_v5 = vld [vmem:[%s4373_s1 + $0x18] sm:$0xff]  ;;  %v206_v6 = vand.u32 4294901760, %v184_v2  ;;  %v186_v7 = vld [vmem:[%s4373_s1 + $0x20] sm:$0xff]  ;;  %v187_v8 = vld [vmem:[%s4373_s1 + $0x28] sm:$0xff] }
   0xf   : > { %v209_v9 = vand.u32 4294901760, %v185_v5  ;;  %v212_v10 = vand.u32 4294901760, %v186_v7  ;;  %v188_v11 = vld [vmem:[%s4373_s1 + $0x30] sm:$0xff]  ;;  %v3611_v12 = vld [vmem:[%s4373_s1 + $0x38] sm:$0xff]  ;;  %v3616_v13 = vld [vmem:[%s4373_s1 + $0x40] sm:$0xff]  ;;  %v215_v15 = vand.u32 4294901760, %v187_v8 }
  0x10   : > { %v3618_v14 = vpack.c.bf16 %v203_v4, %v200_v3  ;;  %v218_v16 = vand.u32 4294901760, %v188_v11  ;;  %v221_v17 = vand.u32 4294901760, %v3611_v12  ;;  %v3624_v18 = vld [vmem:[%s4373_s1 + $0x48] sm:$0xff]  ;;  %v3631_v20 = vld [vmem:[%s4373_s1 + $0x50] sm:$0xff]  ;;  %p163_p3 = scmp.lt.s32.totalorder %s2238_s20, 15  ;;  %v224_v21 = vand.u32 4294901760, %v3616_v13 }
  0x11   : > { %v3626_v19 = vpack.c.bf16 %v209_v9, %v206_v6  ;;  %v227_v22 = vand.u32 4294901760, %v3624_v18  ;;  %v3640_v23 = vld [vmem:[%s4373_s1 + $0x58] sm:$0xff]  ;;  %v3647_v24 = vld [vmem:[%s4373_s1 + $0x60] sm:$0xff]  ;;  %v3652_v25 = vld [vmem:[%s4373_s1 + $0x68] sm:$0xff]  ;;  %v3656_v26 = vsub.f32 %v182_v0, %v200_v3  ;;  %v3660_v27 = vpack.c.bf16 %v215_v15, %v212_v10 }
  0x12   : > { %3062 = vmatprep.subr.bf16.mxu0 %v3618_v14  ;;  %3254 = vmatprep.subr.bf16.mxu1 %v3618_v14  ;;  %s4534_s20 = smov (!%p163_p3, %s2238_s20), 15  ;;  %v3662_v28 = vpack.c.bf16 %v221_v17, %v218_v16  ;;  %v230_v29 = vand.u32 4294901760, %v3631_v20  ;;  %v3668_v30 = vld [vmem:[%s4373_s1 + $0x70] sm:$0xff]  ;;  %v3670_v31 = vsub.f32 %v183_v1, %v203_v4  ;;  %v233_v32 = vand.u32 4294901760, %v3640_v23  ;;  %v3690_v39 = vld [vmem:[%s4373_s1 + $0x78] sm:$0xff] }
  0x13   : > { %3064 = vmatpush3.bf16.msra.mxu0 %v3618_v14  ;;  %3256 = vmatpush3.bf16.msra.mxu1 %v3618_v14  ;;  %4445 = vst [vmem:[#allocation2_spill] sm:$0xff] %v3660_v27  ;;  %s2239_s19 = sshll.u32 %s4534_s20, 3  ;;  %v4387_v33 = vand.u32 4294901760, %v3656_v26  ;;  %v3675_v34 = vsub.f32 %v184_v2, %v206_v6  ;;  %v3677_v35 = vsub.f32 %v185_v5, %v209_v9  ;;  %v4395_v37 = vand.u32 4294901760, %v3647_v24 }
  0x14   : > { %3066 = vmatprep.subr.bf16.mxu0 %v3626_v19  ;;  %3258 = vmatprep.subr.bf16.mxu1 %v3626_v19  ;;  %4446 = vst [vmem:[#allocation3_spill] sm:$0xff] %v3662_v28  ;;  %v3683_v36 = vpack.c.bf16 %v227_v22, %v224_v21  ;;  %v4392_v38 = vand.u32 4294901760, %v3652_v25  ;;  %s3697_s25 = scalar_lea.vmem %s4372_s0, %s2239_s19  ;;  %v4386_v40 = vand.u32 4294901760, %v3670_v31  ;;  %v4391_v41 = vand.u32 4294901760, %v3668_v30  ;;  %s4352_s30 = scalar_lea.vmem %s4375_s3, %s2239_s19 }
  0x15   : > { %v174_v42 = vld [vmem:[%s3697_s25] sm:$0xff]  ;;  %v364_v43 = vsub.f32 %v3656_v26, %v4387_v33  ;;  %v175_v44 = vld [vmem:[%s3697_s25 + $0x8] sm:$0xff]  ;;  %v4385_v45 = vand.u32 4294901760, %v3675_v34  ;;  %v4384_v46 = vand.u32 4294901760, %v3677_v35  ;;  %v4389_v51 = vand.u32 4294901760, %v3690_v39 }
  0x16   : > { %4447 = vst [vmem:[#allocation4_spill] sm:$0xff] %v3683_v36  ;;  %v3712_v47 = vand.u32 4294901760, %v174_v42  ;;  %v371_v48 = vsub.f32 %v3670_v31, %v4386_v40  ;;  %v1141_v49 = vmul.f32 %v174_v42, %v174_v42  ;;  %v3717_v50 = vand.u32 4294901760, %v175_v44 }
  0x17   : > { %3068 = vmatpush3.bf16.msra.mxu0 %v3626_v19  ;;  %3260 = vmatpush3.bf16.msra.mxu1 %v3626_v19  ;;  %v1142_v52 = vmul.f32 %v175_v44, %v175_v44  ;;  %v3720_v53 = vsub.f32 %v186_v7, %v212_v10  ;;  %v3722_v54 = vsub.f32 %v187_v8, %v215_v15  ;;  %v365_v0 = vand.u32 4294901760, %v364_v43 }
  0x18   : > { %3070 = vmatprep.subr.bf16.mxu0 %v3660_v27  ;;  %3262 = vmatprep.subr.bf16.mxu1 %v3660_v27  ;;  %v3725_v55 = vsub.f32 %v174_v42, %v3712_v47  ;;  %v3727_v56 = vand.u32 4294901760, %v1141_v49  ;;  %v3730_v57 = vsub.f32 %v175_v44, %v3717_v50  ;;  %v3732_v58 = vsub.f32 %v188_v11, %v218_v16 }
  0x19   : > { %v3736_v59 = vand.u32 4294901760, %v1142_v52  ;;  %v378_v60 = vsub.f32 %v3675_v34, %v4385_v45  ;;  %v385_v61 = vsub.f32 %v3677_v35, %v4384_v46  ;;  %v3745_v62 = vsub.f32 %v3611_v12, %v221_v17  ;;  %v3887_v45 = vld [vmem:[%s3697_s25 + $0x20] sm:$0xff] }
  0x1a   : > { %v4378_v63 = vand.u32 4294901760, %v3725_v55  ;;  %v372_v1 = vand.u32 4294901760, %v371_v48  ;;  %v3751_v2 = vsub.f32 %v1141_v49, %v3727_v56  ;;  %v3757_v3 = vpack.c.bf16 %v233_v32, %v230_v29  ;;  %4455 = vst [vmem:[#allocation12_spill] sm:$0xff] %v3887_v45 }
  0x1b   : > { %3072 = vmatpush3.bf16.msra.mxu0 %v3660_v27  ;;  %3264 = vmatpush3.bf16.msra.mxu1 %v3660_v27  ;;  %v4376_v4 = vand.u32 4294901760, %v3730_v57  ;;  %v3761_v5 = vsub.f32 %v1142_v52, %v3736_v59  ;;  %v4383_v6 = vand.u32 4294901760, %v3720_v53  ;;  %v3768_v7 = vpack.c.bf16 %v4392_v38, %v4395_v37 }
  0x1c   : > { %3074 = vmatprep.subr.bf16.mxu0 %v3662_v28  ;;  %3266 = vmatprep.subr.bf16.mxu1 %v3662_v28  ;;  %4448 = vst [vmem:[#allocation5_spill] sm:$0xff] %v3757_v3  ;;  %v283_v8 = vsub.f32 %v3725_v55, %v4378_v63  ;;  %v4377_v9 = vand.u32 4294901760, %v3751_v2  ;;  %v4381_v10 = vand.u32 4294901760, %v3722_v54  ;;  %v379_v11 = vand.u32 4294901760, %v378_v60 }
  0x1d   : > { %4449 = vst [vmem:[#allocation6_spill] sm:$0xff] %v3768_v7  ;;  %v386_v12 = vand.u32 4294901760, %v385_v61  ;;  %v4380_v15 = vand.u32 4294901760, %v3732_v58  ;;  %v4379_v16 = vand.u32 4294901760, %v3745_v62  ;;  %v3785_v17 = vpack.c.bf16 %v4389_v51, %v4391_v41  ;;  %v3807_v61 = vld [vmem:[%s3697_s25 + $0x10] sm:$0xff] }
  0x1e   : > { %v284_v42 = vand.u32 4294901760, %v283_v8  ;;  %v3787_v43 = vpack.c.bf16 %v372_v1, %v365_v0  ;;  %v1233_v44 = vsub.f32 %v3751_v2, %v4377_v9  ;;  %v3795_v48 = vsub.f32 %v3730_v57, %v4376_v4  ;;  %4451 = vst [vmem:[#allocation8_spill] sm:$0xff] %v3807_v61 }
  0x1f   : > { %3076 = vmatpush3.bf16.msra.mxu0 %v3662_v28  ;;  %3268 = vmatpush3.bf16.msra.mxu1 %v3662_v28  ;;  %4450 = vst [vmem:[#allocation7_spill] sm:$0xff] %v3785_v17  ;;  %v4382_v49 = vand.u32 4294901760, %v3761_v5  ;;  %v392_v52 = vsub.f32 %v3720_v53, %v4383_v6  ;;  %v3804_v60 = vsub.f32 %v3616_v13, %v224_v21  ;;  %v3818_v4 = vand.u32 4294901760, %v3807_v61 }
  0x20   : > { %3078 = vmatprep.subr.bf16.mxu0 %v3683_v36  ;;  %3270 = vmatprep.subr.bf16.mxu1 %v3683_v36  ;;  %v1234_v0 = vand.u32 4294901760, %v1233_v44  ;;  %v399_v1 = vsub.f32 %v3722_v54, %v4381_v10  ;;  %v3815_v8 = vsub.f32 %v3624_v18, %v227_v22  ;;  %v3822_v13 = vpack.c.bf16 %v386_v12, %v379_v11  ;;  %v3844_v44 = vld [vmem:[%s3697_s25 + $0x18] sm:$0xff] }
  0x21   : > { %2565 = vmatprep.mubr.f32.mxu0 %v284_v42  ;;  %v406_v21 = vsub.f32 %v3732_v58, %v4380_v15  ;;  %v413_v42 = vsub.f32 %v3745_v62, %v4379_v16  ;;  %v4388_v18 = vand.u32 4294901760, %v3804_v60  ;;  %v3836_v11 = vsub.f32 %v3807_v61, %v3818_v4  ;;  %4453 = vst [vmem:[#allocation10_spill] sm:$0xff] %v3844_v44 }
  0x22   : > { %v4390_v22 = vand.u32 4294901760, %v3815_v8  ;;  %v3841_v12 = vsub.f32 %v3631_v20, %v230_v29  ;;  %2829 = vmatprep.mubr.f32.mxu1 %v1234_v0  ;;  %v393_v9 = vand.u32 4294901760, %v392_v52  ;;  %v3849_v63 = vsub.f32 %v3640_v23, %v233_v32 }
  0x23   : > { %3080 = vmatpush3.bf16.msra.mxu0 %v3683_v36  ;;  %3272 = vmatpush3.bf16.msra.mxu1 %v3683_v36  ;;  %4452 = vst [vmem:[#allocation9_spill] sm:$0xff] %v3836_v11  ;;  %v1143_v16 = vmul.f32 %v3807_v61, %v3807_v61  ;;  %v3854_v15 = vand.u32 4294901760, %v3844_v44  ;;  %v294_v10 = vand.u32 4294901760, %v3795_v48  ;;  %v3860_v20 = vsub.f32 %v3761_v5, %v4382_v49 }
  0x24   : > { %3082 = vmatprep.subr.bf16.mxu0 %v3757_v3  ;;  %3274 = vmatprep.subr.bf16.mxu1 %v3757_v3  ;;  %v400_v29 = vand.u32 4294901760, %v399_v1  ;;  %v4393_v52 = vand.u32 4294901760, %v3836_v11  ;;  %v4394_v23 = vand.u32 4294901760, %v3841_v12  ;;  %v1144_v0 = vmul.f32 %v3844_v44, %v3844_v44 }
  0x25   : > { %v3866_v32 = vand.u32 4294901760, %v1143_v16  ;;  %v3870_v48 = vsub.f32 %v3844_v44, %v3854_v15  ;;  %v407_v1 = vand.u32 4294901760, %v406_v21  ;;  %v414_v49 = vand.u32 4294901760, %v413_v42 }
  0x26   : > { %v3879_v6 = vsub.f32 %v3804_v60, %v4388_v18  ;;  %v3884_v46 = vsub.f32 %v3815_v8, %v4390_v22  ;;  %v4400_v40 = vand.u32 4294901760, %v3849_v63  ;;  %v3893_v21 = vand.u32 4294901760, %v1144_v0 }
  0x27   : > { %3084 = vmatpush3.bf16.msra.mxu0 %v3757_v3  ;;  %3276 = vmatpush3.bf16.msra.mxu1 %v3757_v3  ;;  %4454 = vst [vmem:[#allocation11_spill] sm:$0xff] %v3870_v48  ;;  %v3891_v33 = vsub.f32 %v1143_v16, %v3866_v32  ;;  %v3896_v42 = vand.u32 4294901760, %v3887_v45  ;;  %v1244_v18 = vand.u32 4294901760, %v3860_v20  ;;  %v3899_v51 = vpack.c.bf16 %v400_v29, %v393_v9  ;;  %v3921_v29 = vld [vmem:[%s3697_s25 + $0x28] sm:$0xff] }
  0x28   : > { %3086 = vmatprep.subr.bf16.mxu0 %v3768_v7  ;;  %3278 = vmatprep.subr.bf16.mxu1 %v3768_v7  ;;  %v303_v22 = vsub.f32 %v3836_v11, %v4393_v52  ;;  %v3910_v16 = vsub.f32 %v3841_v12, %v4394_v23  ;;  %v3914_v9 = vsub.f32 %v1144_v0, %v3893_v21  ;;  %v3930_v41 = vand.u32 4294901760, %v3921_v29 }
  0x29   : > { %4456 = vst [vmem:[#allocation13_spill] sm:$0xff] %v3891_v33  ;;  %v4401_v38 = vand.u32 4294901760, %v3891_v33  ;;  %v3918_v20 = vsub.f32 %v3887_v45, %v3896_v42  ;;  %4459 = vst [vmem:[#allocation16_spill] sm:$0xff] %v3921_v29  ;;  %v3925_v52 = vpack.c.bf16 %v414_v49, %v407_v1  ;;  %v3935_v0 = vsub.f32 %v3849_v63, %v4400_v40 }
  0x2a   : > { %4457 = vst [vmem:[#allocation14_spill] sm:$0xff] %v3914_v9  ;;  %v4407_v44 = vand.u32 4294901760, %v3914_v9  ;;  %v304_v1 = vand.u32 4294901760, %v303_v22  ;;  %v4460_v23 = vand.u32 4294901760, %v3870_v48  ;;  %v3949_v40 = vsub.f32 %v3921_v29, %v3930_v41 }
  0x2b   : > { %3088 = vmatpush3.bf16.msra.mxu0 %v3768_v7  ;;  %3280 = vmatpush3.bf16.msra.mxu1 %v3768_v7  ;;  %4458 = vst [vmem:[#allocation15_spill] sm:$0xff] %v3918_v20  ;;  %v1253_v61 = vsub.f32 %v3891_v33, %v4401_v38  ;;  %v1145_v7 = vmul.f32 %v3887_v45, %v3887_v45  ;;  %v4462_v49 = vand.u32 4294901760, %v3647_v24  ;;  %v4464_v3 = vand.u32 4294901760, %v3652_v25 }
  0x2c   : > { %3090 = vmatprep.subr.bf16.mxu0 %v3785_v17  ;;  %3282 = vmatprep.subr.bf16.mxu1 %v3785_v17  ;;  %v313_v37 = vsub.f32 %v3870_v48, %v4460_v23  ;;  %4461 = vst [vmem:[#allocation17_spill] sm:$0xff] %v3949_v40  ;;  %v1263_v22 = vsub.f32 %v3914_v9, %v4407_v44  ;;  %v3993_v48 = vld [vmem:[%s3697_s25 + $0x38] sm:$0xff] }
  0x2d   : > { %v3960_v23 = vsub.f32 %v3647_v24, %v4462_v49  ;;  %v1146_v45 = vmul.f32 %v3921_v29, %v3921_v29  ;;  %v3972_v44 = vsub.f32 %v3652_v25, %v4464_v3  ;;  %v3974_v36 = vand.u32 4294901760, %v1145_v7  ;;  %v3978_v49 = vld [vmem:[%s3697_s25 + $0x30] sm:$0xff]  ;;  %4467 = vst [vmem:[#allocation20_spill] sm:$0xff] %v3993_v48 }
  0x2e   : > { %v4421_v24 = vand.u32 4294901760, %v3949_v40  ;;  %4465 = vst [vmem:[#allocation18_spill] sm:$0xff] %v3978_v49  ;;  %v1254_v28 = vand.u32 4294901760, %v1253_v61  ;;  %v3984_v9 = vand.u32 4294901760, %v3978_v49 }
  0x2f   : > { %3092 = vmatpush3.bf16.msra.mxu0 %v3785_v17  ;;  %3284 = vmatpush3.bf16.msra.mxu1 %v3785_v17  ;;  %v4463_v17 = vand.u32 4294901760, %v3918_v20  ;;  %v3981_v27 = vand.u32 4294901760, %v1146_v45  ;;  %v3987_v25 = vsub.f32 %v1145_v7, %v3974_v36  ;;  %v4006_v7 = vand.u32 4294901760, %v3993_v48 }
  0x30   : > { %3094 = vmatprep.subr.bf16.mxu0 %v3787_v43  ;;  %3286 = vmatprep.subr.bf16.mxu1 %v3787_v43  ;;  %v333_v3 = vsub.f32 %v3949_v40, %v4421_v24  ;;  %v4470_v24 = vand.u32 4294901760, %v3668_v30  ;;  %v4471_v40 = vand.u32 4294901760, %v3690_v39 }
  0x31   : > { %v323_v38 = vsub.f32 %v3918_v20, %v4463_v17  ;;  %v314_v17 = vand.u32 4294901760, %v313_v37  ;;  %v1264_v20 = vand.u32 4294901760, %v1263_v22  ;;  %4466 = vst [vmem:[#allocation19_spill] sm:$0xff] %v3987_v25  ;;  %v4003_v37 = vsub.f32 %v3978_v49, %v3984_v9 }
  0x32   : > { %2566 = vmatmul.mubr.f32.vlgmr.msra.gmra.mrb[0].mxu0 %v294_v10  ;;  %2830 = vmatmul.mubr.f32.vlgmr.msra.gmra.mrb[0].mxu1 %v1244_v18  ;;  %v3999_v10 = vsub.f32 %v1146_v45, %v3981_v27  ;;  %v4435_v22 = vand.u32 4294901760, %v3972_v44  ;;  %v4015_v45 = vsub.f32 %v3668_v30, %v4470_v24  ;;  %v4022_v33 = vsub.f32 %v3690_v39, %v4471_v40 }
  0x33   : > { %3096 = vmatpush3.bf16.msra.mxu0 %v3787_v43  ;;  %3288 = vmatpush3.bf16.msra.mxu1 %v3787_v43  ;;  %4469 = vst [vmem:[#allocation22_spill] sm:$0xff] %v4003_v37  ;;  %v324_v18 = vand.u32 4294901760, %v323_v38  ;;  %v4426_v43 = vand.u32 4294901760, %v3987_v25  ;;  %v4430_v61 = vand.u32 4294901760, %v4003_v37  ;;  %v1147_v38 = vmul.f32 %v3978_v49, %v3978_v49 }
  0x34   : > { %4468 = vst [vmem:[#allocation21_spill] sm:$0xff] %v3999_v10  ;;  %3098 = vmatprep.subr.bf16.mxu0 %v3822_v13  ;;  %3290 = vmatprep.subr.bf16.mxu1 %v3822_v13  ;;  %v4428_v29 = vand.u32 4294901760, %v3999_v10  ;;  %v1148_v24 = vmul.f32 %v3993_v48, %v3993_v48  ;;  %v4473_v39 = vand.u32 4294901760, %v3960_v23 }
  0x35   : > { %2568 = vmatprep.mubr.f32.mxu0 %v304_v1  ;;  %2832 = vmatprep.mubr.f32.mxu1 %v1254_v28  ;;  %v1273_v30 = vsub.f32 %v3987_v25, %v4426_v43  ;;  %v334_v1 = vand.u32 4294901760, %v333_v3  ;;  %v4031_v28 = vsub.f32 %v3993_v48, %v4006_v7  ;;  %v4046_v3 = vand.u32 4294901760, %v1147_v38 }
  0x36   : > { %2569 = vmatmul.mubr.f32.gmra.mrb[2].mxu0 %v314_v17  ;;  %2833 = vmatmul.mubr.f32.gmra.mrb[2].mxu1 %v1264_v20  ;;  %v448_v40 = vsub.f32 %v3960_v23, %v4473_v39  ;;  %v1283_v20 = vsub.f32 %v3999_v10, %v4428_v29  ;;  %v343_v17 = vsub.f32 %v4003_v37, %v4430_v61  ;;  %v4054_v49 = vand.u32 4294901760, %v1148_v24 }
  0x37   : > { %4472 = vst [vmem:[#allocation23_spill] sm:$0xff] %v4031_v28  ;;  %3100 = vmatpush3.bf16.msra.mxu0 %v3822_v13  ;;  %3292 = vmatpush3.bf16.msra.mxu1 %v3822_v13  ;;  %v455_v13 = vsub.f32 %v3972_v44, %v4435_v22  ;;  %v1274_v43 = vand.u32 4294901760, %v1273_v30  ;;  %v4436_v39 = vand.u32 4294901760, %v4031_v28  ;;  %v461_v61 = vand.u32 4294901760, %v4015_v45 }
  0x38   : > { %3102 = vmatprep.subr.bf16.mxu0 %v3899_v51  ;;  %3294 = vmatprep.subr.bf16.mxu1 %v3899_v51  ;;  %v1284_v29 = vand.u32 4294901760, %v1283_v20  ;;  %v344_v48 = vand.u32 4294901760, %v343_v17  ;;  %v4058_v37 = vsub.f32 %v1147_v38, %v4046_v3  ;;  %v468_v10 = vand.u32 4294901760, %v4022_v33 }
  0x39   : > { %2571 = vmatprep.mubr.f32.mxu0 %v324_v18  ;;  %2835 = vmatprep.mubr.f32.mxu1 %v1274_v43  ;;  %v353_v30 = vsub.f32 %v4031_v28, %v4436_v39  ;;  %v4065_v22 = vsub.f32 %v1148_v24, %v4054_v49  ;;  %v4474_v43 = vand.u32 4294901760, %v3879_v6  ;;  %v4475_v38 = vand.u32 4294901760, %v3884_v46 }
  0x3a   : > { %2572 = vmatmul.mubr.f32.gmra.mrb[4].mxu0 %v334_v1  ;;  %v4476_v20 = vand.u32 4294901760, %v3910_v16  ;;  %v4477_v24 = vand.u32 4294901760, %v3935_v0  ;;  %v456_v25 = vand.u32 4294901760, %v455_v13  ;;  %2836 = vmatmul.mubr.f32.gmra.mrb[4].mxu1 %v1284_v29  ;;  %v462_v18 = vsub.f32 %v4015_v45, %v461_v61 }
  0x3b   : > { %3104 = vmatpush3.bf16.msra.mxu0 %v3899_v51  ;;  %3296 = vmatpush3.bf16.msra.mxu1 %v3899_v51  ;;  %v3109_v1 = vpack.c.bf16 %v4475_v38, %v4474_v43  ;;  %v354_v39 = vand.u32 4294901760, %v353_v30  ;;  %v4443_v28 = vand.u32 4294901760, %v4065_v22  ;;  %v449_v51 = vand.u32 4294901760, %v448_v40 }
  0x3c   : > { %3106 = vmatprep.subr.bf16.mxu0 %v3925_v52  ;;  %3298 = vmatprep.subr.bf16.mxu1 %v3925_v52  ;;  %v3113_v17 = vpack.c.bf16 %v4477_v24, %v4476_v20  ;;  %v4478_v11 = vand.u32 4294901760, %v4058_v37  ;;  %v469_v46 = vsub.f32 %v4022_v33, %v468_v10  ;;  %v4479_v0 = vand.u32 4294901760, %v3656_v26 }
  0x3d   : > { %2574 = vmatprep.mubr.f32.mxu0 %v344_v48  ;;  %v1303_v16 = vsub.f32 %v4065_v22, %v4443_v28  ;;  %v4480_v40 = vand.u32 4294901760, %v3670_v31  ;;  %v4481_v48 = vand.u32 4294901760, %v3675_v34  ;;  %v4482_v29 = vand.u32 4294901760, %v3677_v35 }
  0x3e   : > { %v1293_v6 = vsub.f32 %v4058_v37, %v4478_v11  ;;  %2575 = vmatmul.mubr.f32.gmra.mrb[6].mxu0 %v354_v39  ;;  %v4483_v39 = vand.u32 4294901760, %v3720_v53  ;;  %v4484_v43 = vand.u32 4294901760, %v3722_v54  ;;  %v4485_v20 = vand.u32 4294901760, %v3732_v58 }
  0x3f   : > { %v4093_v13 = vpack.c.bf16 %v4480_v40, %v4479_v0  ;;  %v4099_v30 = vpack.c.bf16 %v4482_v29, %v4481_v48  ;;  %3108 = vmatpush3.bf16.msra.mxu0 %v3925_v52  ;;  %3300 = vmatpush3.bf16.msra.mxu1 %v3925_v52  ;;  %v4486_v24 = vand.u32 4294901760, %v3745_v62  ;;  %v4488_v40 = vand.u32 4294901760, %v3804_v60 }
  0x40   : > { %v1294_v11 = vand.u32 4294901760, %v1293_v6  ;;  %v4107_v38 = vpack.c.bf16 %v4484_v43, %v4483_v39  ;;  %v4489_v48 = vand.u32 4294901760, %v3815_v8  ;;  %3110 = vmatprep.subr.bf16.mxu0 %v3109_v1  ;;  %3302 = vmatprep.subr.bf16.mxu1 %v3109_v1  ;;  %v1304_v52 = vand.u32 4294901760, %v1303_v16 }
  0x41   : > { %v4113_v0 = vpack.c.bf16 %v4486_v24, %v4485_v20  ;;  %v4490_v6 = vand.u32 4294901760, %v3841_v12  ;;  %v4491_v39 = vand.u32 4294901760, %v3849_v63  ;;  %v4492_v28 = vand.u32 4294901760, %v3960_v23  ;;  %2609 = vmatprep.mubr.f32.mxu0 %v3712_v47 }
  0x42   : > { %v4119_v29 = vpack.c.bf16 %v4489_v48, %v4488_v40  ;;  %v4493_v20 = vand.u32 4294901760, %v3972_v44  ;;  %2838 = vmatprep.mubr.f32.mxu1 %v1294_v11  ;;  %v3117_v16 = vpack.c.bf16 %v456_v25, %v449_v51  ;;  %v463_v40 = vand.u32 4294901760, %v462_v18  ;;  %v4505_v18 = vld [vmem:[#allocation23_spill] sm:$0xff]  ;;  %v4510_v11 = vld [vmem:[#allocation6_spill] sm:$0xff] }
  0x43   : > { %4487 = vst [vmem:[#allocation24_spill] sm:$0xff] %v4113_v0  ;;  %v4125_v43 = vpack.c.bf16 %v4491_v39, %v4490_v6  ;;  %v4133_v0 = vpack.c.bf16 %v468_v10, %v461_v61  ;;  %2839 = vmatmul.mubr.f32.gmra.mrb[6].mxu1 %v1304_v52  ;;  %3112 = vmatpush3.bf16.msra.mxu0 %v3109_v1  ;;  %v470_v48 = vand.u32 4294901760, %v469_v46  ;;  %v4508_v51 = vand.u32 4294901760, %v3751_v2  ;;  %v4509_v46 = vld [vmem:[#allocation5_spill] sm:$0xff] }
  0x44   : > { %v4131_v24 = vpack.c.bf16 %v4493_v20, %v4492_v28  ;;  %3304 = vmatpush3.bf16.msra.mxu1 %v3109_v1  ;;  %3114 = vmatprep.subr.bf16.mxu0 %v3113_v17  ;;  %v3125_v61 = vpack.c.bf16 %v3670_v31, %v3656_v26  ;;  %v3129_v25 = vpack.c.bf16 %v3677_v35, %v3675_v34  ;;  %v4506_v1 = vld [vmem:[#allocation4_spill] sm:$0xff]  ;;  %v4513_v52 = vand.u32 4294901760, %v3761_v5 }
  0x45   : > { %3306 = vmatprep.subr.bf16.mxu1 %v3113_v17  ;;  %2873 = vmatprep.mubr.f32.mxu1 %v3727_v56  ;;  %v3121_v28 = vpack.c.bf16 %v470_v48, %v463_v40  ;;  %v3133_v10 = vpack.c.bf16 %v3722_v54, %v3720_v53  ;;  %v3137_v26 = vpack.c.bf16 %v3745_v62, %v3732_v58  ;;  %v4495_v54 = vld [vmem:[#allocation13_spill] sm:$0xff]  ;;  %v4496_v58 = vld [vmem:[#allocation11_spill] sm:$0xff]  ;;  %v4497_v62 = vld [vmem:[#allocation14_spill] sm:$0xff] }
  0x46   : > { %v3141_v31 = vpack.c.bf16 %v3815_v8, %v3804_v60  ;;  %v3145_v34 = vpack.c.bf16 %v3849_v63, %v3841_v12  ;;  %v3149_v35 = vpack.c.bf16 %v3972_v44, %v3960_v23  ;;  %v3153_v53 = vpack.c.bf16 %v4022_v33, %v4015_v45  ;;  %v4494_v33 = vld [vmem:[#allocation9_spill] sm:$0xff]  ;;  %v4498_v63 = vld [vmem:[#allocation2_spill] sm:$0xff]  ;;  %v4499_v60 = vld [vmem:[#allocation15_spill] sm:$0xff] }
  0x47   : > { %3116 = vmatpush3.bf16.msra.mxu0 %v3113_v17  ;;  %v4500_v8 = vld [vmem:[#allocation19_spill] sm:$0xff]  ;;  %v4501_v12 = vld [vmem:[#allocation17_spill] sm:$0xff]  ;;  %v4504_v45 = vld [vmem:[#allocation22_spill] sm:$0xff]  ;;  %v4514_v6 = vand.u32 4294901760, %v4494_v33  ;;  %v4515_v39 = vand.u32 4294901760, %v4495_v54 }
  0x48   : > { %3308 = vmatpush3.bf16.msra.mxu1 %v3113_v17  ;;  %3118 = vmatprep.subr.bf16.mxu0 %v3117_v16  ;;  %v4502_v44 = vld [vmem:[#allocation21_spill] sm:$0xff]  ;;  %v4503_v23 = vld [vmem:[#allocation3_spill] sm:$0xff]  ;;  %v4507_v17 = vand.u32 4294901760, %v3725_v55  ;;  %v4519_v20 = vand.u32 4294901760, %v4500_v8  ;;  %v4523_v48 = vand.u32 4294901760, %v4504_v45 }
  0x49   : > { %3310 = vmatprep.subr.bf16.mxu1 %v3117_v16  ;;  %v4521_v40 = vand.u32 4294901760, %v4502_v44 }
  0x4b   : > { %3120 = vmatpush3.bf16.msra.mxu0 %v3117_v16 }
  0x4c   : > { %3312 = vmatpush3.bf16.msra.mxu1 %v3117_v16  ;;  %3122 = vmatprep.subr.bf16.mxu0 %v3121_v28  ;;  %v4520_v16 = vand.u32 4294901760, %v4501_v12 }
  0x4d   : > { %3314 = vmatprep.subr.bf16.mxu1 %v3121_v28 }
  0x4f   : > { %3124 = vmatpush3.bf16.msra.mxu0 %v3121_v28 }
  0x50   : > { %3316 = vmatpush3.bf16.msra.mxu1 %v3121_v28  ;;  %3126 = vmatprep.subr.bf16.mxu0 %v3125_v61  ;;  %v4524_v28 = vand.u32 4294901760, %v4058_v37 }
  0x51   : > { %3318 = vmatprep.subr.bf16.mxu1 %v3125_v61 }
  0x52   : > { %2610 = vmatmul.mubr.f32.vlgmr.msra.gmra.mrb[0].mxu0 %v3717_v50 }
  0x53   : > { %2874 = vmatmul.mubr.f32.vlgmr.msra.gmra.mrb[0].mxu1 %v3736_v59  ;;  %3128 = vmatpush3.bf16.msra.mxu0 %v3125_v61 }
  0x54   : > { %3320 = vmatpush3.bf16.msra.mxu1 %v3125_v61  ;;  %3130 = vmatprep.subr.bf16.mxu0 %v3129_v25  ;;  %v4525_v61 = vand.u32 4294901760, %v4505_v18 }
  0x55   : > { %3322 = vmatprep.subr.bf16.mxu1 %v3129_v25  ;;  %2612 = vmatprep.mubr.f32.mxu0 %v3818_v4 }
  0x56   : > { %2876 = vmatprep.mubr.f32.mxu1 %v3866_v32  ;;  %2613 = vmatmul.mubr.f32.gmra.mrb[2].mxu0 %v3854_v15 }
  0x57   : > { %2877 = vmatmul.mubr.f32.gmra.mrb[2].mxu1 %v3893_v21  ;;  %3132 = vmatpush3.bf16.msra.mxu0 %v3129_v25 }
  0x58   : > { %3324 = vmatpush3.bf16.msra.mxu1 %v3129_v25  ;;  %3134 = vmatprep.subr.bf16.mxu0 %v3133_v10  ;;  %v4526_v25 = vand.u32 4294901760, %v4065_v22 }
  0x59   : > { %3326 = vmatprep.subr.bf16.mxu1 %v3133_v10  ;;  %2615 = vmatprep.mubr.f32.mxu0 %v3896_v42 }
  0x5a   : > { %2879 = vmatprep.mubr.f32.mxu1 %v3974_v36  ;;  %2616 = vmatmul.mubr.f32.gmra.mrb[4].mxu0 %v3930_v41 }
  0x5b   : > { %2880 = vmatmul.mubr.f32.gmra.mrb[4].mxu1 %v3981_v27  ;;  %3136 = vmatpush3.bf16.msra.mxu0 %v3133_v10 }
  0x5c   : > { %3328 = vmatpush3.bf16.msra.mxu1 %v3133_v10  ;;  %3138 = vmatprep.subr.bf16.mxu0 %v3137_v26 }
  0x5d   : > { %3330 = vmatprep.subr.bf16.mxu1 %v3137_v26  ;;  %2618 = vmatprep.mubr.f32.mxu0 %v3984_v9 }
  0x5e   : > { %2882 = vmatprep.mubr.f32.mxu1 %v4046_v3  ;;  %2619 = vmatmul.mubr.f32.gmra.mrb[6].mxu0 %v4006_v7 }
  0x5f   : > { %2883 = vmatmul.mubr.f32.gmra.mrb[6].mxu1 %v4054_v49  ;;  %3140 = vmatpush3.bf16.msra.mxu0 %v3137_v26 }
  0x60   : > { %3332 = vmatpush3.bf16.msra.mxu1 %v3137_v26  ;;  %3142 = vmatprep.subr.bf16.mxu0 %v3141_v31 }
  0x61   : > { %3334 = vmatprep.subr.bf16.mxu1 %v3141_v31  ;;  %2653 = vmatprep.mubr.f32.mxu0 %v3725_v55  ;;  %v4511_v55 = vld [vmem:[#allocation7_spill] sm:$0xff] }
  0x62   : > { %2917 = vmatprep.mubr.f32.mxu1 %v3751_v2  ;;  %v4512_v2 = vand.u32 4294901760, %v3730_v57 }
  0x63   : > { %3144 = vmatpush3.bf16.msra.mxu0 %v3141_v31 }
  0x64   : > { %3336 = vmatpush3.bf16.msra.mxu1 %v3141_v31  ;;  %3146 = vmatprep.subr.bf16.mxu0 %v3145_v34 }
  0x65   : > { %3338 = vmatprep.subr.bf16.mxu1 %v3145_v34 }
  0x67   : > { %3148 = vmatpush3.bf16.msra.mxu0 %v3145_v34 }
  0x68   : > { %3340 = vmatpush3.bf16.msra.mxu1 %v3145_v34  ;;  %3150 = vmatprep.subr.bf16.mxu0 %v3149_v35 }
  0x69   : > { %3342 = vmatprep.subr.bf16.mxu1 %v3149_v35 }
  0x6b   : > { %3152 = vmatpush3.bf16.msra.mxu0 %v3149_v35 }
  0x6c   : > { %3344 = vmatpush3.bf16.msra.mxu1 %v3149_v35  ;;  %3154 = vmatprep.subr.bf16.mxu0 %v3153_v53 }
  0x6d   : > { %3346 = vmatprep.subr.bf16.mxu1 %v3153_v53 }
  0x6f   : > { %3156 = vmatpush3.bf16.msra.mxu0 %v3153_v53 }
  0x70   : > { %3348 = vmatpush3.bf16.msra.mxu1 %v3153_v53  ;;  %3158 = vmatprep.subr.bf16.mxu0 %v3618_v14 }
  0x71   : > { %3350 = vmatprep.subr.bf16.mxu1 %v3618_v14 }
  0x72   : > { %2654 = vmatmul.mubr.f32.vlgmr.msra.gmra.mrb[0].mxu0 %v3730_v57  ;;  %v4516_v57 = vand.u32 4294901760, %v4496_v58 }
  0x73   : > { %2918 = vmatmul.mubr.f32.vlgmr.msra.gmra.mrb[0].mxu1 %v3761_v5  ;;  %3160 = vmatpush3.bf16.msra.mxu0 %v3618_v14  ;;  %v4517_v5 = vand.u32 4294901760, %v4497_v62 }
  0x74   : > { %3352 = vmatpush3.bf16.msra.mxu1 %v3618_v14  ;;  %3162 = vmatprep.subr.bf16.mxu0 %v3626_v19 }
  0x75   : > { %3354 = vmatprep.subr.bf16.mxu1 %v3626_v19  ;;  %2656 = vmatprep.mubr.f32.mxu0 %v4494_v33 }
  0x76   : > { %2920 = vmatprep.mubr.f32.mxu1 %v4495_v54  ;;  %2657 = vmatmul.mubr.f32.gmra.mrb[2].mxu0 %v4496_v58 }
  0x77   : > { %2921 = vmatmul.mubr.f32.gmra.mrb[2].mxu1 %v4497_v62  ;;  %3164 = vmatpush3.bf16.msra.mxu0 %v3626_v19 }
  0x78   : > { %3356 = vmatpush3.bf16.msra.mxu1 %v3626_v19  ;;  %3166 = vmatprep.subr.bf16.mxu0 %v4498_v63 }
  0x79   : > { %3358 = vmatprep.subr.bf16.mxu1 %v4498_v63  ;;  %2659 = vmatprep.mubr.f32.mxu0 %v4499_v60 }
  0x7a   : > { %2923 = vmatprep.mubr.f32.mxu1 %v4500_v8  ;;  %2660 = vmatmul.mubr.f32.gmra.mrb[4].mxu0 %v4501_v12 }
  0x7b   : > { %2924 = vmatmul.mubr.f32.gmra.mrb[4].mxu1 %v4502_v44  ;;  %3168 = vmatpush3.bf16.msra.mxu0 %v4498_v63 }
  0x7c   : > { %3360 = vmatpush3.bf16.msra.mxu1 %v4498_v63  ;;  %3170 = vmatprep.subr.bf16.mxu0 %v4503_v23 }
  0x7d   : > { %3362 = vmatprep.subr.bf16.mxu1 %v4503_v23  ;;  %2662 = vmatprep.mubr.f32.mxu0 %v4504_v45 }
  0x7e   : > { %2926 = vmatprep.mubr.f32.mxu1 %v4058_v37  ;;  %2663 = vmatmul.mubr.f32.gmra.mrb[6].mxu0 %v4505_v18 }
  0x7f   : > { %2927 = vmatmul.mubr.f32.gmra.mrb[6].mxu1 %v4065_v22  ;;  %3172 = vmatpush3.bf16.msra.mxu0 %v4503_v23 }
  0x80   : > { %3364 = vmatpush3.bf16.msra.mxu1 %v4503_v23  ;;  %3174 = vmatprep.subr.bf16.mxu0 %v4506_v1 }
  0x81   : > { %3366 = vmatprep.subr.bf16.mxu1 %v4506_v1  ;;  %2697 = vmatprep.mubr.f32.mxu0 %v4507_v17 }
  0x82   : > { %2961 = vmatprep.mubr.f32.mxu1 %v4508_v51 }
  0x83   : > { %3176 = vmatpush3.bf16.msra.mxu0 %v4506_v1 }
  0x84   : > { %3368 = vmatpush3.bf16.msra.mxu1 %v4506_v1  ;;  %3178 = vmatprep.subr.bf16.mxu0 %v4509_v46 }
  0x85   : > { %3370 = vmatprep.subr.bf16.mxu1 %v4509_v46 }
  0x87   : > { %3180 = vmatpush3.bf16.msra.mxu0 %v4509_v46 }
  0x88   : > { %3372 = vmatpush3.bf16.msra.mxu1 %v4509_v46  ;;  %3182 = vmatprep.subr.bf16.mxu0 %v4510_v11 }
  0x89   : > { %3374 = vmatprep.subr.bf16.mxu1 %v4510_v11 }
  0x8b   : > { %3184 = vmatpush3.bf16.msra.mxu0 %v4510_v11 }
  0x8c   : > { %3376 = vmatpush3.bf16.msra.mxu1 %v4510_v11  ;;  %3186 = vmatprep.subr.bf16.mxu0 %v4511_v55 }
  0x8d   : > { %3378 = vmatprep.subr.bf16.mxu1 %v4511_v55 }
  0x8f   : > { %3188 = vmatpush3.bf16.msra.mxu0 %v4511_v55 }
  0x90   : > { %3380 = vmatpush3.bf16.msra.mxu1 %v4511_v55  ;;  %3190 = vmatprep.subr.bf16.mxu0 %v4093_v13 }
  0x91   : > { %3382 = vmatprep.subr.bf16.mxu1 %v4093_v13 }
  0x92   : > { %2698 = vmatmul.mubr.f32.vlgmr.msra.gmra.mrb[0].mxu0 %v4512_v2 }
  0x93   : > { %2962 = vmatmul.mubr.f32.vlgmr.msra.gmra.mrb[0].mxu1 %v4513_v52  ;;  %3192 = vmatpush3.bf16.msra.mxu0 %v4093_v13 }
  0x94   : > { %3384 = vmatpush3.bf16.msra.mxu1 %v4093_v13  ;;  %3194 = vmatprep.subr.bf16.mxu0 %v4099_v30  ;;  %v4518_v13 = vand.u32 4294901760, %v4499_v60 }
  0x95   : > { %3386 = vmatprep.subr.bf16.mxu1 %v4099_v30  ;;  %2700 = vmatprep.mubr.f32.mxu0 %v4514_v6 }
  0x96   : > { %2964 = vmatprep.mubr.f32.mxu1 %v4515_v39  ;;  %2701 = vmatmul.mubr.f32.gmra.mrb[2].mxu0 %v4516_v57 }
  0x97   : > { %2965 = vmatmul.mubr.f32.gmra.mrb[2].mxu1 %v4517_v5  ;;  %3196 = vmatpush3.bf16.msra.mxu0 %v4099_v30 }
  0x98   : > { %3388 = vmatpush3.bf16.msra.mxu1 %v4099_v30  ;;  %3198 = vmatprep.subr.bf16.mxu0 %v4107_v38  ;;  %v4522_v30 = vld [vmem:[#allocation24_spill] sm:$0xff] }
  0x99   : > { %3390 = vmatprep.subr.bf16.mxu1 %v4107_v38  ;;  %2703 = vmatprep.mubr.f32.mxu0 %v4518_v13 }
  0x9a   : > { %2967 = vmatprep.mubr.f32.mxu1 %v4519_v20  ;;  %2704 = vmatmul.mubr.f32.gmra.mrb[4].mxu0 %v4520_v16 }
  0x9b   : > { %2968 = vmatmul.mubr.f32.gmra.mrb[4].mxu1 %v4521_v40  ;;  %3200 = vmatpush3.bf16.msra.mxu0 %v4107_v38 }
  0x9c   : > { %3392 = vmatpush3.bf16.msra.mxu1 %v4107_v38  ;;  %3202 = vmatprep.subr.bf16.mxu0 %v4522_v30 }
  0x9d   : > { %3394 = vmatprep.subr.bf16.mxu1 %v4522_v30  ;;  %2706 = vmatprep.mubr.f32.mxu0 %v4523_v48 }
  0x9e   : > { %2970 = vmatprep.mubr.f32.mxu1 %v4524_v28  ;;  %2707 = vmatmul.mubr.f32.gmra.mrb[6].mxu0 %v4525_v61 }
  0x9f   : > { %2971 = vmatmul.mubr.f32.gmra.mrb[6].mxu1 %v4526_v25  ;;  %3204 = vmatpush3.bf16.msra.mxu0 %v4522_v30  ;;  %v2242_v25 = vld [vmem:[%s4374_s2] ss:$0 sm:$0xff] }
  0xa0   : > { %3396 = vmatpush3.bf16.msra.mxu1 %v4522_v30  ;;  %3206 = vmatprep.subr.bf16.mxu0 %v4119_v29 }
  0xa1   : > { %3398 = vmatprep.subr.bf16.mxu1 %v4119_v29  ;;  %2741 = vmatprep.mubr.f32.mxu0 %v3712_v47 }
  0xa2   : > { %3005 = vmatprep.mubr.f32.mxu1 %v3727_v56 }
  0xa3   : > { %3208 = vmatpush3.bf16.msra.mxu0 %v4119_v29 }
  0xa4   : > { %3400 = vmatpush3.bf16.msra.mxu1 %v4119_v29  ;;  %3210 = vmatprep.subr.bf16.mxu0 %v4125_v43 }
  0xa5   : > { %3402 = vmatprep.subr.bf16.mxu1 %v4125_v43 }
  0xa7   : > { %3212 = vmatpush3.bf16.msra.mxu0 %v4125_v43 }
  0xa8   : > { %3404 = vmatpush3.bf16.msra.mxu1 %v4125_v43  ;;  %3214 = vmatprep.subr.bf16.mxu0 %v4131_v24 }
  0xa9   : > { %3406 = vmatprep.subr.bf16.mxu1 %v4131_v24 }
  0xab   : > { %3216 = vmatpush3.bf16.msra.mxu0 %v4131_v24 }
  0xac   : > { %3408 = vmatpush3.bf16.msra.mxu1 %v4131_v24  ;;  %3218 = vmatprep.subr.bf16.mxu0 %v4133_v0 }
  0xad   : > { %3410 = vmatprep.subr.bf16.mxu1 %v4133_v0 }
  0xaf   : > { %3220 = vmatpush3.bf16.msra.mxu0 %v4133_v0 }
  0xb0   : > { %3412 = vmatpush3.bf16.msra.mxu1 %v4133_v0  ;;  %3222 = vmatprep.subr.bf16.mxu0 %v3618_v14 }
  0xb1   : > { %3414 = vmatprep.subr.bf16.mxu1 %v3618_v14 }
  0xb2   : > { %2742 = vmatmul.mubr.f32.vlgmr.msra.gmra.mrb[0].mxu0 %v3717_v50 }
  0xb3   : > { %3006 = vmatmul.mubr.f32.vlgmr.msra.gmra.mrb[0].mxu1 %v3736_v59  ;;  %3224 = vmatpush3.bf16.msra.mxu0 %v3618_v14 }
  0xb4   : > { %3416 = vmatpush3.bf16.msra.mxu1 %v3618_v14  ;;  %3226 = vmatprep.subr.bf16.mxu0 %v3626_v19 }
  0xb5   : > { %3418 = vmatprep.subr.bf16.mxu1 %v3626_v19  ;;  %2744 = vmatprep.mubr.f32.mxu0 %v3818_v4 }
  0xb6   : > { %3008 = vmatprep.mubr.f32.mxu1 %v3866_v32  ;;  %2745 = vmatmul.mubr.f32.gmra.mrb[2].mxu0 %v3854_v15 }
  0xb7   : > { %3009 = vmatmul.mubr.f32.gmra.mrb[2].mxu1 %v3893_v21  ;;  %3228 = vmatpush3.bf16.msra.mxu0 %v3626_v19 }
  0xb8   : > { %3420 = vmatpush3.bf16.msra.mxu1 %v3626_v19  ;;  %3230 = vmatprep.subr.bf16.mxu0 %v4498_v63 }
  0xb9   : > { %3422 = vmatprep.subr.bf16.mxu1 %v4498_v63  ;;  %2747 = vmatprep.mubr.f32.mxu0 %v3896_v42 }
  0xba   : > { %3011 = vmatprep.mubr.f32.mxu1 %v3974_v36  ;;  %2748 = vmatmul.mubr.f32.gmra.mrb[4].mxu0 %v3930_v41 }
  0xbb   : > { %3012 = vmatmul.mubr.f32.gmra.mrb[4].mxu1 %v3981_v27  ;;  %3232 = vmatpush3.bf16.msra.mxu0 %v4498_v63 }
  0xbc   : > { %3424 = vmatpush3.bf16.msra.mxu1 %v4498_v63  ;;  %3234 = vmatprep.subr.bf16.mxu0 %v4503_v23 }
  0xbd   : > { %3426 = vmatprep.subr.bf16.mxu1 %v4503_v23  ;;  %2750 = vmatprep.mubr.f32.mxu0 %v3984_v9 }
  0xbe   : > { %3014 = vmatprep.mubr.f32.mxu1 %v4046_v3  ;;  %2751 = vmatmul.mubr.f32.gmra.mrb[6].mxu0 %v4006_v7 }
  0xbf   : > { %3015 = vmatmul.mubr.f32.gmra.mrb[6].mxu1 %v4054_v49  ;;  %3236 = vmatpush3.bf16.msra.mxu0 %v4503_v23 }
  0xc0   : > { %3428 = vmatpush3.bf16.msra.mxu1 %v4503_v23  ;;  %3238 = vmatprep.subr.bf16.mxu0 %v4506_v1 }
  0xc1   : > { %3430 = vmatprep.subr.bf16.mxu1 %v4506_v1  ;;  %2785 = vmatprep.mubr.f32.mxu0 %v3712_v47 }
  0xc2   : > { %3049 = vmatprep.mubr.f32.mxu1 %v3727_v56 }
  0xc3   : > { %3240 = vmatpush3.bf16.msra.mxu0 %v4506_v1 }
  0xc4   : > { %3432 = vmatpush3.bf16.msra.mxu1 %v4506_v1  ;;  %3242 = vmatprep.subr.bf16.mxu0 %v4509_v46 }
  0xc5   : > { %3434 = vmatprep.subr.bf16.mxu1 %v4509_v46 }
  0xc7   : > { %3244 = vmatpush3.bf16.msra.mxu0 %v4509_v46 }
  0xc8   : > { %3436 = vmatpush3.bf16.msra.mxu1 %v4509_v46  ;;  %3246 = vmatprep.subr.bf16.mxu0 %v4510_v11 }
  0xc9   : > { %3438 = vmatprep.subr.bf16.mxu1 %v4510_v11 }
  0xcb   : > { %3248 = vmatpush3.bf16.msra.mxu0 %v4510_v11 }
  0xcc   : > { %3440 = vmatpush3.bf16.msra.mxu1 %v4510_v11  ;;  %3250 = vmatprep.subr.bf16.mxu0 %v4511_v55 }
  0xcd   : > { %3442 = vmatprep.subr.bf16.mxu1 %v4511_v55 }
  0xcf   : > { %3252 = vmatpush3.bf16.msra.mxu0 %v4511_v55 }
  0xd0   : > { %3444 = vmatpush3.bf16.msra.mxu1 %v4511_v55 }
  0xd2   : > { %2786 = vmatmul.mubr.f32.vlgmr.msra.gmra.mrb[0].mxu0 %v3717_v50 }
  0xd3   : > { %3050 = vmatmul.mubr.f32.vlgmr.msra.gmra.mrb[0].mxu1 %v3736_v59  ;;  %2788 = vmatprep.mubr.f32.mxu0 %v3818_v4 }
  0xd4   : > { %3052 = vmatprep.mubr.f32.mxu1 %v3866_v32 }
  0xd6   : > { %2789 = vmatmul.mubr.f32.gmra.mrb[2].mxu0 %v3854_v15 }
  0xd7   : > { %3053 = vmatmul.mubr.f32.gmra.mrb[2].mxu1 %v3893_v21  ;;  %2791 = vmatprep.mubr.f32.mxu0 %v3896_v42 }
  0xd8   : > { %3055 = vmatprep.mubr.f32.mxu1 %v3974_v36 }
  0xda   : > { %2792 = vmatmul.mubr.f32.gmra.mrb[4].mxu0 %v3930_v41 }
  0xdb   : > { %3056 = vmatmul.mubr.f32.gmra.mrb[4].mxu1 %v3981_v27  ;;  %2794 = vmatprep.mubr.f32.mxu0 %v3984_v9 }
  0xdc   : > { %3058 = vmatprep.mubr.f32.mxu1 %v4046_v3 }
  0xde   : > { %2795 = vmatmul.mubr.f32.gmra.mrb[6].mxu0 %v4006_v7 }
  0xdf   : > { %3059 = vmatmul.mubr.f32.gmra.mrb[6].mxu1 %v4054_v49 }
 0x1a5   : > { %v2787_v14 = vpop.f32.mrb[0].mxu0 }
 0x1a6   : > { %v3051_v19 = vpop.f32.mrb[0].mxu1  ;;  %v2092_v47 = vmul.f32 0.03125, %v2787_v14  ;;  %v1095_v50 = vpop.f32.mrb[1].mxu0 }
 0x1a7   : > { %v2045_v56 = vpop.f32.mrb[1].mxu1  ;;  %v2091_v59 = vmul.f32 0.03125, %v1095_v50  ;;  %v2100_v36 = vmul.f32 0.03125, %v3051_v19 }
 0x1a8   : > { %v2108_v4 = vmul.f32 %v2092_v47, %v2092_v47  ;;  %v2099_v41 = vmul.f32 0.03125, %v2045_v56  ;;  %v3549_v47 = vld [vmem:[%s3697_s25 + $0x8] sm:$0xff] }
 0x1a9   : > { %v2107_v15 = vmul.f32 %v2091_v59, %v2091_v59  ;;  %v2790_v32 = vpop.f32.mrb[2].mxu0  ;;  %v3550_v59 = vld [vmem:[%s3697_s25] sm:$0xff] }
 0x1aa   : > { %v3054_v27 = vpop.f32.mrb[2].mxu1  ;;  %v2116_v21 = vsub.f32 %v2100_v36, %v2108_v4  ;;  %v2094_v42 = vmul.f32 0.03125, %v2790_v32  ;;  %v1107_v9 = vpop.f32.mrb[3].mxu0 }
 0x1ab   : > { %v2057_v37 = vpop.f32.mrb[3].mxu1  ;;  %v2115_v22 = vsub.f32 %v2099_v41, %v2107_v15  ;;  %v2093_v7 = vmul.f32 0.03125, %v1107_v9  ;;  %v2102_v38 = vmul.f32 0.03125, %v3054_v27  ;;  %v4527_v27 = vld [vmem:[#allocation10_spill] sm:$0xff] }
 0x1ac   : > { %v2124_v3 = vmax.f32 %v2116_v21, 0.0  ;;  %v2110_v49 = vmul.f32 %v2094_v42, %v2094_v42  ;;  %v2101_v43 = vmul.f32 0.03125, %v2057_v37  ;;  %v4528_v42 = vld [vmem:[#allocation8_spill] sm:$0xff] }
 0x1ad   : > { %v2123_v0 = vmax.f32 %v2115_v22, 0.0  ;;  %v2109_v29 = vmul.f32 %v2093_v7, %v2093_v7  ;;  %v2793_v24 = vpop.f32.mrb[4].mxu0 }
 0x1ae   : > { %v3057_v10 = vpop.f32.mrb[4].mxu1  ;;  %v2132_v26 = vadd.f32 1e-05, %v2124_v3  ;;  %v2118_v31 = vsub.f32 %v2102_v38, %v2110_v49  ;;  %v2096_v34 = vmul.f32 0.03125, %v2793_v24  ;;  %v1119_v35 = vpop.f32.mrb[5].mxu0  ;;  %v4529_v49 = vld [vmem:[#allocation16_spill] sm:$0xff] }
 0x1af   : > { %v2069_v53 = vpop.f32.mrb[5].mxu1  ;;  %v2131_v33 = vadd.f32 1e-05, %v2123_v0  ;;  %v2117_v54 = vsub.f32 %v2101_v43, %v2109_v29  ;;  %v2095_v58 = vmul.f32 0.03125, %v1119_v35  ;;  %v2104_v60 = vmul.f32 0.03125, %v3057_v10  ;;  %v4530_v0 = vld [vmem:[#allocation12_spill] sm:$0xff] }
 0x1b0   : > { %3533 = vrsqrt.f32 %v2132_v26  ;;  %v2126_v62 = vmax.f32 %v2118_v31, 0.0  ;;  %v2112_v63 = vmul.f32 %v2096_v34, %v2096_v34  ;;  %v2103_v44 = vmul.f32 0.03125, %v2069_v53  ;;  %v4531_v31 = vld [vmem:[#allocation20_spill] sm:$0xff]  ;;  %v4532_v35 = vld [vmem:[#allocation18_spill] sm:$0xff] }
 0x1b1   : > { %3535 = vrsqrt.f32 %v2131_v33  ;;  %v2125_v8 = vmax.f32 %v2117_v54, 0.0  ;;  %v2111_v12 = vmul.f32 %v2095_v58, %v2095_v58  ;;  %v2796_v23 = vpop.f32.mrb[6].mxu0 }
 0x1b2   : > { %v3060_v45 = vpop.f32.mrb[6].mxu1  ;;  %v2134_v18 = vadd.f32 1e-05, %v2126_v62  ;;  %v2120_v1 = vsub.f32 %v2104_v60, %v2112_v63  ;;  %v2098_v17 = vmul.f32 0.03125, %v2796_v23  ;;  %v1131_v51 = vpop.f32.mrb[7].mxu0 }
 0x1b3   : > { %v2081_v46 = vpop.f32.mrb[7].mxu1  ;;  %v2133_v11 = vadd.f32 1e-05, %v2125_v8  ;;  %v2119_v55 = vsub.f32 %v2103_v44, %v2111_v12  ;;  %v2097_v2 = vmul.f32 0.03125, %v1131_v51  ;;  %v2106_v39 = vmul.f32 0.03125, %v3060_v45 }
 0x1b4   : > { %3537 = vrsqrt.f32 %v2134_v18  ;;  %v2128_v52 = vmax.f32 %v2120_v1, 0.0  ;;  %v2114_v6 = vmul.f32 %v2098_v17, %v2098_v17  ;;  %v2105_v13 = vmul.f32 0.03125, %v2081_v46 }
 0x1b5   : > { %3539 = vrsqrt.f32 %v2133_v11  ;;  %v2127_v57 = vmax.f32 %v2119_v55, 0.0  ;;  %v2113_v5 = vmul.f32 %v2097_v2, %v2097_v2 }
 0x1b6   : > { %v2136_v20 = vadd.f32 1e-05, %v2128_v52  ;;  %v2122_v16 = vsub.f32 %v2106_v39, %v2114_v6 }
 0x1b7   : > { %v2135_v40 = vadd.f32 1e-05, %v2127_v57  ;;  %v2121_v30 = vsub.f32 %v2105_v13, %v2113_v5 }
 0x1b8   : > { %3541 = vrsqrt.f32 %v2136_v20  ;;  %v2130_v48 = vmax.f32 %v2122_v16, 0.0 }
 0x1b9   : > { %3543 = vrsqrt.f32 %v2135_v40  ;;  %v2129_v28 = vmax.f32 %v2121_v30, 0.0 }
 0x1ba   : > { %v3534_v61 = vpop.eup %3533  ;;  %v2138_v14 = vadd.f32 1e-05, %v2130_v48 }
 0x1bb   : > { %v3536_v19 = vpop.eup %3535  ;;  %v2148_v50 = vmul.f32 %v3549_v47, %v3534_v61  ;;  %v2137_v56 = vadd.f32 1e-05, %v2129_v28 }
 0x1bc   : > { %v2147_v4 = vmul.f32 %v3550_v59, %v3536_v19  ;;  %3545 = vrsqrt.f32 %v2138_v14 }
 0x1bd   : > { %v2162_v36 = vmul.f32 %v2242_v25, %v2148_v50  ;;  %3547 = vrsqrt.f32 %v2137_v56 }
 0x1be   : > { %v3538_v15 = vpop.eup %3537  ;;  %v2161_v41 = vmul.f32 %v2242_v25, %v2147_v4 }
 0x1bf   : > { %v3540_v32 = vpop.eup %3539  ;;  %2170 = vst [vmem:[%s4352_s30 + $0x8] sm:$0xff] %v2162_v36  ;;  %v2150_v21 = vmul.f32 %v3538_v15, %v4527_v27 }
 0x1c0   : > { %2169 = vst [vmem:[%s4352_s30] sm:$0xff] %v2161_v41  ;;  %v2149_v9 = vmul.f32 %v3540_v32, %v4528_v42 }
 0x1c1   : > { %v2164_v37 = vmul.f32 %v2242_v25, %v2150_v21 }
 0x1c2   : > { %v3542_v22 = vpop.eup %3541  ;;  %v2163_v7 = vmul.f32 %v2242_v25, %v2149_v9 }
 0x1c3   : > { %v3544_v3 = vpop.eup %3543  ;;  %2172 = vst [vmem:[%s4352_s30 + $0x18] sm:$0xff] %v2164_v37  ;;  %v2152_v38 = vmul.f32 %v3542_v22, %v4529_v49 }
 0x1c4   : > { %2171 = vst [vmem:[%s4352_s30 + $0x10] sm:$0xff] %v2163_v7  ;;  %v2151_v29 = vmul.f32 %v3544_v3, %v4530_v0 }
 0x1c5   : > { %v2166_v43 = vmul.f32 %v2242_v25, %v2152_v38 }
 0x1c6   : > { %v3546_v24 = vpop.eup %3545  ;;  %v2165_v10 = vmul.f32 %v2242_v25, %v2151_v29 }
 0x1c7   : > { %v3548_v26 = vpop.eup %3547  ;;  %2174 = vst [vmem:[%s4352_s30 + $0x28] sm:$0xff] %v2166_v43  ;;  %v2154_v34 = vmul.f32 %v3546_v24, %v4531_v31 }
 0x1c8   : > { %2173 = vst [vmem:[%s4352_s30 + $0x20] sm:$0xff] %v2165_v10  ;;  %v2153_v53 = vmul.f32 %v3548_v26, %v4532_v35 }
 0x1c9   : > { %v2168_v33 = vmul.f32 %v2242_v25, %v2154_v34 }
 0x1ca   : > { %v2167_v54 = vmul.f32 %v2242_v25, %v2153_v53 }
 0x1cb   : > { %2176 = vst [vmem:[%s4352_s30 + $0x38] sm:$0xff] %v2168_v33 }
 0x1cc   : > { %2175 = vst [vmem:[%s4352_s30 + $0x30] sm:$0xff] %v2167_v54 }
 0x1cd PF: > { %s13_s12 = sadd.s32 1, %s3557_s12  }
 0x1ce   : > { %p10_p4 = scmp.ge.s32.totalorder %s13_s12, 4  }
 0x1d0   :  { %12 = sbr.rel (!%p10_p4) target bundleno = 1 (0x1), region = 62 }

</bundles_post_ra>
